<compile_context>
chip_gen: v7x
topology: tpu7x:2x2x1
jax: 0.10.0
libtpu: 0.0.40
codegen_flags: <defaults>
</compile_context>

<pallas_src>
import jax
import jax.numpy as jnp
from jax.experimental import pallas as pl
from jax.experimental.pallas import tpu as pltpu


def _round_up(n: int, m: int) -> int:
    return ((n + m - 1) // m) * m


def _vmem_limit_bytes() -> int:
    """Generation-aware VMEM budget: ~80% of physical, conservative fallback."""
    phys = 64 * 1024 * 1024  # conservative (v7x per-TC physical VMEM)
    try:
        info = pltpu.get_tpu_info()
        cap = getattr(info, "vmem_capacity_bytes", None)
        if cap:
            phys = int(cap)
    except Exception:
        pass
    return min(int(phys * 0.8), 112 * 1024 * 1024)


def mlp_kernel(x_ref, w1_ref, b1_ref, w2_ref, b2_ref, w3_ref, b3_ref, o_ref):
    # Three MXU matmuls + EUP tanh, fully fused in VMEM, f32 accumulation.
    hi = jax.lax.Precision.HIGHEST
    x = x_ref[...]
    h1 = jnp.tanh(
        jnp.dot(x, w1_ref[...], preferred_element_type=jnp.float32, precision=hi)
        + b1_ref[...]
    )
    h2 = jnp.tanh(
        jnp.dot(h1, w2_ref[...], preferred_element_type=jnp.float32, precision=hi)
        + b2_ref[...]
    )
    y = (
        jnp.dot(h2, w3_ref[...], preferred_element_type=jnp.float32, precision=hi)
        + b3_ref[...]
    )
    o_ref[...] = y.astype(o_ref.dtype)


def init_params(key, input_size, hidden_size, output_size):
    """Deterministic init mimicking nn.Linear's uniform(-1/sqrt(fan_in), ...).

    Weights are stored pre-transposed as (in, out) = PyTorch weight.T so the
    kernel is pure y = x @ W + b with no in-kernel transpose.
    """
    ks = jax.random.split(key, 6)

    def linear(kw, kb, fan_in, fan_out):
        bound = 1.0 / jnp.sqrt(fan_in)
        w = jax.random.uniform(kw, (fan_in, fan_out), jnp.float32, -bound, bound)
        b = jax.random.uniform(kb, (1, fan_out), jnp.float32, -bound, bound)
        return w, b

    w1, b1 = linear(ks[0], ks[1], input_size, hidden_size)
    w2, b2 = linear(ks[2], ks[3], hidden_size, hidden_size)
    w3, b3 = linear(ks[4], ks[5], hidden_size, output_size)
    return {"w1": w1, "b1": b1, "w2": w2, "b2": b2, "w3": w3, "b3": b3}


def prepare_params(params):
    """One-time (init-time) padding of the hidden dim to a multiple of 128.

    Input/output feature dims are left unpadded (kernel uses full-dim blocks).
    """
    w1, b1 = params["w1"], params["b1"]
    w2, b2 = params["w2"], params["b2"]
    w3, b3 = params["w3"], params["b3"]
    I, H = w1.shape
    O = w3.shape[1]
    H_p = _round_up(H, 128)

    w1p = jnp.zeros((I, H_p), jnp.float32).at[:, :H].set(w1)
    b1p = jnp.zeros((1, H_p), jnp.float32).at[:, :H].set(b1)
    w2p = jnp.zeros((H_p, H_p), jnp.float32).at[:H, :H].set(w2)
    b2p = jnp.zeros((1, H_p), jnp.float32).at[:, :H].set(b2)
    w3p = jnp.zeros((H_p, O), jnp.float32).at[:H, :].set(w3)
    b3p = b3.astype(jnp.float32)
    return {"w1": w1p, "b1": b1p, "w2": w2p, "b2": b2p, "w3": w3p, "b3": b3p}


def mlp_forward(x, prepared, *, batch_tile=512):
    """x: (B, I) float32; prepared: output of prepare_params. Returns (B, O)."""
    w1, b1 = prepared["w1"], prepared["b1"]
    w2, b2 = prepared["w2"], prepared["b2"]
    w3, b3 = prepared["w3"], prepared["b3"]

    B, I = x.shape
    assert w1.shape[0] == I, "x feature dim must match w1 fan_in"
    H_p = w2.shape[0]
    O = w3.shape[1]

    # Batch tile: multiple of 8 (sublane), large enough to amortize the
    # ~0.35us/grid-step overhead.
    TB = min(_round_up(B, 8), _round_up(batch_tile, 8))
    # Guarantee >= 2 grid steps so the "parallel" batch axis can shard across
    # v7x's two TensorCores (neutral on single-TC v5e/v6e).
    if _round_up(B, TB) // TB == 1 and TB > 8:
        TB = _round_up((B + 1) // 2, 8)
    B_p = _round_up(B, TB)

    # Only the batch dim is padded (feature dims stay un-padded in HBM).
    if B_p != B:
        xp = jnp.zeros((B_p, I), jnp.float32).at[:B, :].set(x)
    else:
        xp = x

    grid = (B_p // TB,)
    resident = pl.Buffered(1)  # constant operands: no double buffer needed

    out = pl.pallas_call(
        mlp_kernel,
        out_shape=jax.ShapeDtypeStruct((B_p, O), jnp.float32),
        grid_spec=pl.GridSpec(
            grid=grid,
            in_specs=[
                # x: tiled over batch -> auto double-buffered input DMA.
                pl.BlockSpec((TB, I), lambda i: (i, 0)),
                # Weights / biases: same block every step -> resident, 1 buffer.
                pl.BlockSpec((I, H_p), lambda i: (0, 0), pipeline_mode=resident),
                pl.BlockSpec((1, H_p), lambda i: (0, 0), pipeline_mode=resident),
                pl.BlockSpec((H_p, H_p), lambda i: (0, 0), pipeline_mode=resident),
                pl.BlockSpec((1, H_p), lambda i: (0, 0), pipeline_mode=resident),
                pl.BlockSpec((H_p, O), lambda i: (0, 0), pipeline_mode=resident),
                pl.BlockSpec((1, O), lambda i: (0, 0), pipeline_mode=resident),
            ],
            out_specs=pl.BlockSpec((TB, O), lambda i: (i, 0)),
        ),
        compiler_params=pltpu.CompilerParams(
            # Batch tiles are independent -> shard across TensorCores on v7x.
            dimension_semantics=("parallel",),
            vmem_limit_bytes=_vmem_limit_bytes(),
        ),
    )(xp, w1, b1, w2, b2, w3, b3)

    return out[:B] if B_p != B else out


def mlp_reference(x, p):
    h1 = jnp.tanh(x @ p["w1"] + p["b1"])
    h2 = jnp.tanh(h1 @ p["w2"] + p["b2"])
    return h2 @ p["w3"] + p["b3"]


if __name__ == "__main__":
    key = jax.random.PRNGKey(0)
    k_x, k_p, k_x2 = jax.random.split(key, 3)

    # Small shapes matching the module spec.
    batch, input_size, hidden_size, output_size = 8, 16, 32, 8
    x = jax.random.normal(k_x, (batch, input_size), jnp.float32)
    raw_params = init_params(k_p, input_size, hidden_size, output_size)
    prepared = prepare_params(raw_params)  # one-time, init-time padding

    out = jax.block_until_ready(mlp_forward(x, prepared))
    ref = mlp_reference(x, raw_params)
    assert out.shape == (batch, output_size)
    assert jnp.allclose(out, ref, atol=1e-5, rtol=1e-5), "mismatch vs reference"

    # Exercise the multi-step grid + batch-padding path (non-multiple batch).
    batch2 = 200
    x2 = jax.random.normal(k_x2, (batch2, input_size), jnp.float32)
    out2 = jax.block_until_ready(mlp_forward(x2, prepared, batch_tile=128))
    ref2 = mlp_reference(x2, raw_params)
    assert out2.shape == (batch2, output_size)
    assert jnp.allclose(out2, ref2, atol=1e-5, rtol=1e-5), "mismatch (tiled batch)"

    print("KERNEL_OK")
</pallas_src>

<mosaic_0001>
module attributes {stable_mosaic.version = 11 : i64} {
  func.func @mlp_kernel(%arg0: i32, %arg1: memref<8x16xf32, #tpu.memory_space<vmem>>, %arg2: memref<16x128xf32, #tpu.memory_space<vmem>>, %arg3: memref<1x128xf32, #tpu.memory_space<vmem>>, %arg4: memref<128x128xf32, #tpu.memory_space<vmem>>, %arg5: memref<1x128xf32, #tpu.memory_space<vmem>>, %arg6: memref<128x8xf32, #tpu.memory_space<vmem>>, %arg7: memref<1x8xf32, #tpu.memory_space<vmem>>, %arg8: memref<8x8xf32, #tpu.memory_space<vmem>>) attributes {dimension_semantics = [#tpu.dimension_semantics<parallel>], iteration_bounds = array<i64: 1>, scalar_prefetch = 0 : i64, scratch_operands = 0 : i64, tpu.core_type = #tpu.core_type<tc>, window_params = [{transform_indices = @transform_0, window_bounds = array<i64: 8, 16>}, {pipeline_mode = #tpu.pipeline_mode<synchronous>, transform_indices = @transform_1, window_bounds = array<i64: 16, 128>}, {pipeline_mode = #tpu.pipeline_mode<synchronous>, transform_indices = @transform_2, window_bounds = array<i64: 1, 128>}, {pipeline_mode = #tpu.pipeline_mode<synchronous>, transform_indices = @transform_3, window_bounds = array<i64: 128, 128>}, {pipeline_mode = #tpu.pipeline_mode<synchronous>, transform_indices = @transform_4, window_bounds = array<i64: 1, 128>}, {pipeline_mode = #tpu.pipeline_mode<synchronous>, transform_indices = @transform_5, window_bounds = array<i64: 128, 8>}, {pipeline_mode = #tpu.pipeline_mode<synchronous>, transform_indices = @transform_6, window_bounds = array<i64: 1, 8>}, {transform_indices = @transform_7, window_bounds = array<i64: 8, 8>}]} {
    %c0 = arith.constant 0 : index
    %c0_0 = arith.constant 0 : index
    %0 = vector.load %arg1[%c0, %c0_0] : memref<8x16xf32, #tpu.memory_space<vmem>>, vector<8x16xf32>
    %c0_1 = arith.constant 0 : index
    %c0_2 = arith.constant 0 : index
    %1 = vector.load %arg2[%c0_1, %c0_2] : memref<16x128xf32, #tpu.memory_space<vmem>>, vector<16x128xf32>
    %cst = arith.constant dense<0.000000e+00> : vector<8x128xf32>
    %2 = tpu.matmul %0, %1, %cst {dimension_numbers = #tpu.dot_dimension_numbers<[1], [0], [0], [1], [0, 0, 1, 1], [], []>, precision = #tpu.contract_precision<fp32>} : vector<8x16xf32>, vector<16x128xf32>, vector<8x128xf32> -> vector<8x128xf32>
    %c0_3 = arith.constant 0 : index
    %c0_4 = arith.constant 0 : index
    %3 = vector.load %arg3[%c0_3, %c0_4] : memref<1x128xf32, #tpu.memory_space<vmem>>, vector<1x128xf32>
    %4 = vector.broadcast %3 : vector<1x128xf32> to vector<8x128xf32>
    %5 = arith.addf %2, %4 : vector<8x128xf32>
    %6 = math.tanh %5 : vector<8x128xf32>
    %c0_5 = arith.constant 0 : index
    %c0_6 = arith.constant 0 : index
    %7 = vector.load %arg4[%c0_5, %c0_6] : memref<128x128xf32, #tpu.memory_space<vmem>>, vector<128x128xf32>
    %cst_7 = arith.constant dense<0.000000e+00> : vector<8x128xf32>
    %8 = tpu.matmul %6, %7, %cst_7 {dimension_numbers = #tpu.dot_dimension_numbers<[1], [0], [0], [1], [0, 0, 1, 1], [], []>, precision = #tpu.contract_precision<fp32>} : vector<8x128xf32>, vector<128x128xf32>, vector<8x128xf32> -> vector<8x128xf32>
    %c0_8 = arith.constant 0 : index
    %c0_9 = arith.constant 0 : index
    %9 = vector.load %arg5[%c0_8, %c0_9] : memref<1x128xf32, #tpu.memory_space<vmem>>, vector<1x128xf32>
    %10 = vector.broadcast %9 : vector<1x128xf32> to vector<8x128xf32>
    %11 = arith.addf %8, %10 : vector<8x128xf32>
    %12 = math.tanh %11 : vector<8x128xf32>
    %c0_10 = arith.constant 0 : index
    %c0_11 = arith.constant 0 : index
    %13 = vector.load %arg6[%c0_10, %c0_11] : memref<128x8xf32, #tpu.memory_space<vmem>>, vector<128x8xf32>
    %cst_12 = arith.constant dense<0.000000e+00> : vector<8x8xf32>
    %14 = tpu.matmul %12, %13, %cst_12 {dimension_numbers = #tpu.dot_dimension_numbers<[1], [0], [0], [1], [0, 0, 1, 1], [], []>, precision = #tpu.contract_precision<fp32>} : vector<8x128xf32>, vector<128x8xf32>, vector<8x8xf32> -> vector<8x8xf32>
    %c0_13 = arith.constant 0 : index
    %c0_14 = arith.constant 0 : index
    %15 = vector.load %arg7[%c0_13, %c0_14] : memref<1x8xf32, #tpu.memory_space<vmem>>, vector<1x8xf32>
    %16 = vector.broadcast %15 : vector<1x8xf32> to vector<8x8xf32>
    %17 = arith.addf %14, %16 : vector<8x8xf32>
    %c0_15 = arith.constant 0 : index
    %c0_16 = arith.constant 0 : index
    %18 = vector.load %arg8[%c0_15, %c0_16] : memref<8x8xf32, #tpu.memory_space<vmem>>, vector<8x8xf32>
    tpu.vector_store %arg8[%c0_15, %c0_16], %17 {strides = array<i32>} : memref<8x8xf32, #tpu.memory_space<vmem>>, vector<8x8xf32>,
    return
  }
  func.func @transform_0(%arg0: i32) -> (i32, i32) {
    %c0_i32 = arith.constant 0 : i32
    %c0_i32_0 = arith.constant 0 : i32
    return %arg0, %c0_i32 : i32, i32
  }
  func.func @transform_1(%arg0: i32) -> (i32, i32) {
    %c0_i32 = arith.constant 0 : i32
    %c0_i32_0 = arith.constant 0 : i32
    %c0_i32_1 = arith.constant 0 : i32
    return %c0_i32, %c0_i32_0 : i32, i32
  }
  func.func @transform_2(%arg0: i32) -> (i32, i32) {
    %c0_i32 = arith.constant 0 : i32
    %c0_i32_0 = arith.constant 0 : i32
    %c0_i32_1 = arith.constant 0 : i32
    return %c0_i32, %c0_i32_0 : i32, i32
  }
  func.func @transform_3(%arg0: i32) -> (i32, i32) {
    %c0_i32 = arith.constant 0 : i32
    %c0_i32_0 = arith.constant 0 : i32
    %c0_i32_1 = arith.constant 0 : i32
    return %c0_i32, %c0_i32_0 : i32, i32
  }
  func.func @transform_4(%arg0: i32) -> (i32, i32) {
    %c0_i32 = arith.constant 0 : i32
    %c0_i32_0 = arith.constant 0 : i32
    %c0_i32_1 = arith.constant 0 : i32
    return %c0_i32, %c0_i32_0 : i32, i32
  }
  func.func @transform_5(%arg0: i32) -> (i32, i32) {
    %c0_i32 = arith.constant 0 : i32
    %c0_i32_0 = arith.constant 0 : i32
    %c0_i32_1 = arith.constant 0 : i32
    return %c0_i32, %c0_i32_0 : i32, i32
  }
  func.func @transform_6(%arg0: i32) -> (i32, i32) {
    %c0_i32 = arith.constant 0 : i32
    %c0_i32_0 = arith.constant 0 : i32
    %c0_i32_1 = arith.constant 0 : i32
    return %c0_i32, %c0_i32_0 : i32, i32
  }
  func.func @transform_7(%arg0: i32) -> (i32, i32) {
    %c0_i32 = arith.constant 0 : i32
    %c0_i32_0 = arith.constant 0 : i32
    return %arg0, %c0_i32 : i32, i32
  }
}

</mosaic_0001>

<bundles_post_ra>
// kernel: tpu_custom_call.1
= control target key start
LH: loop header
LB: loop body
LE: loop exit
PB: predicated region body
PF: predicated region fallthrough
CT: control target
= control target key end

     0   :  { %12 = vsyncpa [#allocation3], 0  ;;  %s3672_s0 = inlined_call_operand.hbm [shape: f32[8,16], index: 0, kind: input, shape index: {}]   ;;  %s3673_s1 = inlined_call_operand.vmem [shape: f32[16,128], index: 1, kind: input, shape index: {}]   ;;  %s3674_s2 = inlined_call_operand.vmem [shape: f32[1,128], index: 2, kind: input, shape index: {}]   ;;  %s3675_s3 = inlined_call_operand.vmem [shape: f32[128,128], index: 3, kind: input, shape index: {}]   ;;  %s3676_s4 = inlined_call_operand.vmem [shape: f32[1,128], index: 4, kind: input, shape index: {}]   ;;  %s3677_s5 = inlined_call_operand.vmem [shape: f32[128,8], index: 5, kind: input, shape index: {}]   ;;  %s3678_s6 = inlined_call_operand.vmem [shape: f32[1,8], index: 6, kind: input, shape index: {}]   ;;  %s3679_s7 = inlined_call_operand.hbm [shape: f32[8,8], index: 7, kind: output, shape index: {}]  }
   0x1   :  { %13 = vsyncpa [#allocation4], 0  ;;  %s2941_s24 = smov [#allocation2]   ;;  %s2893_s28 = scalar_lea.hbm %s3672_s0, 128 }
   0x2   :  { %s20_s25 = sshll.u32 %s2941_s24, 4  ;;  %p2894_p0 = scmp.ne.s32.totalorder %s3672_s0, %s2893_s28  ;;  %s21_s25 = int_to_ptr.vmem [resolvable:$true] %s20_s25 }
   0x3   :  { %p2897_p1 = scmp.lt.u32.totalorder %s2893_s28, %s3672_s0 }
   0x5   :  { %p2899_p2 = pnand %p2897_p1, %p2894_p0 }
   0x7   :  { %2902 = shalt.err (!%p2899_p2)
}
   0x8   :  { %s2903_s10 = scalar_lea.vmem %s21_s25, 128  ;;  %p2908_p4 = scmp.lt.s32.totalorder %s21_s25, %s21_s25 }
   0x9   :  { %p2904_p3 = scmp.ne.s32.totalorder %s21_s25, %s2903_s10  ;;  %p2909_p5 = scmp.lt.s32.totalorder %s2903_s10, %s2903_s10 }
   0xb   :  { %p2910_p6 = por %p2909_p5, %p2908_p4 }
   0xd   :  { %p2911_p7 = pnand %p2910_p6, %p2904_p3 }
   0xf   :  { %2914 = shalt.err (!%p2911_p7)
}
  0x10   :  { %23 = dma.hbm_to_vmem [thread:$0]  %s3672_s0, 128, %s21_s25, [#allocation3]  }
  0x11   :  { %2937 = dma.done.wait [#allocation3], 128  }
  0x12   :  { %2938 = vsyncadd [#allocation3], 4294967168  ;;  %v2942_v0 = vmov 0.0|0.0   ;;  %vm2943_vm0 = vmmov 0   ;;  %v2944_v1 = vmov 0.0   ;;  %vm49_vm1 = vcmask 130048  }
  0x13   :  { %2555 = vmatprep.subr.bf16.mxu0 %v2942_v0  ;;  %2109 = vmatprep.mubr.msk.f32.mxu0 %vm2943_vm0, %v2944_v1  ;;  %v40_v2 = vld [vmem:[%s3673_s1] sm:$0xff]  ;;  %v41_v3 = vld [vmem:[%s3673_s1 + $0x8] sm:$0xff]  ;;  %v515_v32 = vld [vmem:[%s3675_s3 + $0x10] sm:$0xff]  ;;  %s2945_s29 = smov [#allocation5]   ;;  %vm1842_vm2 = vcmask 64512  }
  0x14   :  { %2546 = vmatprep.subr.bf16.mxu1 %v2942_v0  ;;  %2088 = vmatprep.mubr.msk.f32.mxu1 %vm2943_vm0, %v2944_v1  ;;  %v39_v4 = vld [vmem:[#allocation2] sm:$0xff]  ;;  %v54_v5 = vand.u32 4294901760, %v40_v2  ;;  %v57_v6 = vand.u32 4294901760, %v41_v3  ;;  %v514_v9 = vld [vmem:[%s3675_s3 + $0x8] sm:$0xff]  ;;  %v516_v33 = vld [vmem:[%s3675_s3 + $0x18] sm:$0xff]  ;;  %v543_v34 = vand.u32 4294901760, %v515_v32 }
  0x15   :  { %v51_v7 = vsel %vm49_vm1, %v39_v4, 0  ;;  %v513_v8 = vld [vmem:[%s3675_s3] sm:$0xff]  ;;  %v540_v12 = vand.u32 4294901760, %v514_v9  ;;  %v546_v35 = vand.u32 4294901760, %v516_v33  ;;  %v518_v40 = vld [vmem:[%s3675_s3 + $0x28] sm:$0xff]  ;;  %v519_v44 = vld [vmem:[%s3675_s3 + $0x30] sm:$0xff] }
  0x16   :  { %v120_v10 = vand.u32 4294901760, %v51_v7  ;;  %v537_v11 = vand.u32 4294901760, %v513_v8  ;;  %v2547_v13 = vpack.c.bf16 %v57_v6, %v54_v5  ;;  %v132_v14 = vsub.f32 %v40_v2, %v54_v5  ;;  %v517_v39 = vld [vmem:[%s3675_s3 + $0x20] sm:$0xff]  ;;  %v520_v45 = vld [vmem:[%s3675_s3 + $0x38] sm:$0xff]  ;;  %v522_v50 = vld [vmem:[%s3675_s3 + $0x48] sm:$0xff]  ;;  %s1850_s30 = sshll.u32 %s2945_s29, 4  ;;  %s1851_s30 = int_to_ptr.vmem [resolvable:$true] %s1850_s30 }
  0x17   :  { %v139_v15 = vsub.f32 %v41_v3, %v57_v6  ;;  %v3018_v18 = vsub.f32 %v514_v9, %v540_v12  ;;  %v3048_v36 = vpack.c.bf16 %v546_v35, %v543_v34  ;;  %v3050_v37 = vsub.f32 %v515_v32, %v543_v34  ;;  %v521_v49 = vld [vmem:[%s3675_s3 + $0x40] sm:$0xff]  ;;  %v523_v54 = vld [vmem:[%s3675_s3 + $0x50] sm:$0xff]  ;;  %v524_v55 = vld [vmem:[%s3675_s3 + $0x58] sm:$0xff]  ;;  %s2915_s8 = scalar_lea.vmem %s1851_s30, 128  ;;  %p2920_p9 = scmp.lt.s32.totalorder %s1851_s30, %s1851_s30 }
  0x18   :  { %v121_v16 = vsub.f32 %v51_v7, %v120_v10  ;;  %v3016_v17 = vsub.f32 %v513_v8, %v537_v11  ;;  %2557 = vmatpush3.bf16.msra.mxu0 %v2547_v13  ;;  %2548 = vmatpush3.bf16.msra.mxu1 %v2547_v13  ;;  %v133_v19 = vand.u32 4294901760, %v132_v14  ;;  %v3034_v31 = vpack.c.bf16 %v540_v12, %v537_v11  ;;  %v525_v59 = vld [vmem:[%s3675_s3 + $0x60] sm:$0xff]  ;;  %v526_v60 = vld [vmem:[%s3675_s3 + $0x68] sm:$0xff]  ;;  %v527_v5 = vld [vmem:[%s3675_s3 + $0x70] sm:$0xff]  ;;  %p2916_p8 = scmp.ne.s32.totalorder %s1851_s30, %s2915_s8  ;;  %p2921_p10 = scmp.lt.s32.totalorder %s2915_s8, %s2915_s8 }
  0x19   :  { %v140_v20 = vand.u32 4294901760, %v139_v15  ;;  %2549 = vmatprep.subr.bf16.mxu1 %v2942_v0  ;;  %2558 = vmatprep.subr.bf16.mxu0 %v2942_v0  ;;  %v2553_v30 = vpack.c.bf16 %v139_v15, %v132_v14  ;;  %v3052_v38 = vsub.f32 %v516_v33, %v546_v35  ;;  %v549_v41 = vand.u32 4294901760, %v517_v39  ;;  %v528_v6 = vld [vmem:[%s3675_s3 + $0x78] sm:$0xff] }
  0x1a   :  { %v122_v21 = vand.u32 4294901760, %v121_v16  ;;  %v134_v22 = vsub.f32 %v132_v14, %v133_v19  ;;  %v552_v42 = vand.u32 4294901760, %v518_v40  ;;  %v555_v46 = vand.u32 4294901760, %v519_v44  ;;  %p2922_p11 = por %p2921_p10, %p2920_p9 }
  0x1b   :  { %v141_v23 = vsub.f32 %v139_v15, %v140_v20  ;;  %v2559_v24 = vpack.c.bf16 %v140_v20, %v133_v19  ;;  %v558_v47 = vand.u32 4294901760, %v520_v45  ;;  %v561_v51 = vand.u32 4294901760, %v521_v49 }
  0x1c   :  { %2110 = vmatmul.mubr.f32.vlgmr.msra.gmra.mrb[0].mxu0 %v122_v21  ;;  %v123_v25 = vsub.f32 %v121_v16, %v122_v21  ;;  %v135_v26 = vand.u32 4294901760, %v134_v22  ;;  %v3062_v43 = vpack.c.bf16 %v552_v42, %v549_v41  ;;  %v564_v52 = vand.u32 4294901760, %v522_v50  ;;  %p2923_p12 = pnand %p2922_p11, %p2916_p8 }
  0x1d   :  { %v142_v27 = vand.u32 4294901760, %v141_v23  ;;  %2560 = vmatpush3.bf16.msra.mxu0 %v2559_v24  ;;  %2116 = vmatprep.mubr.msk.f32.mxu0 %vm2943_vm0, %v2944_v1  ;;  %v3072_v48 = vpack.c.bf16 %v558_v47, %v555_v46  ;;  %v567_v56 = vand.u32 4294901760, %v523_v54  ;;  %v570_v57 = vand.u32 4294901760, %v524_v55 }
  0x1e   :  { %v124_v28 = vand.u32 4294901760, %v123_v25  ;;  %2561 = vmatprep.subr.bf16.mxu0 %v2942_v0  ;;  %v3082_v53 = vpack.c.bf16 %v564_v52, %v561_v51  ;;  %v573_v61 = vand.u32 4294901760, %v525_v59  ;;  %v576_v62 = vand.u32 4294901760, %v526_v60 }
  0x1f   :  { %v2550_v29 = vpack.c.bf16 %v142_v27, %v135_v26  ;;  %v3092_v58 = vpack.c.bf16 %v570_v57, %v567_v56  ;;  %v3102_v63 = vsub.f32 %v517_v39, %v549_v41  ;;  %v3104_v2 = vsub.f32 %v518_v40, %v552_v42 }
  0x20   :  { %2089 = vmatmul.mubr.f32.vlgmr.msra.gmra.mrb[0].mxu1 %v124_v28  ;;  %v3106_v3 = vsub.f32 %v519_v44, %v555_v46  ;;  %v3108_v4 = vsub.f32 %v520_v45, %v558_v47  ;;  %v3116_v7 = vsub.f32 %v521_v49, %v561_v51  ;;  %v3118_v8 = vsub.f32 %v522_v50, %v564_v52 }
  0x21   :  { %2551 = vmatpush3.bf16.msra.mxu1 %v2550_v29  ;;  %2095 = vmatprep.mubr.msk.f32.mxu1 %vm2943_vm0, %v2944_v1  ;;  %v3120_v9 = vsub.f32 %v523_v54, %v567_v56  ;;  %v3124_v11 = vpack.c.bf16 %v576_v62, %v573_v61  ;;  %v3126_v12 = vsub.f32 %v525_v59, %v573_v61  ;;  %v579_v14 = vand.u32 4294901760, %v527_v5 }
  0x22   :  { %2552 = vmatprep.subr.bf16.mxu1 %v2942_v0  ;;  %v582_v15 = vand.u32 4294901760, %v528_v6  ;;  %v637_v19 = vand.u32 4294901760, %v3018_v18  ;;  %v644_v27 = vand.u32 4294901760, %v3050_v37  ;;  %v651_v28 = vand.u32 4294901760, %v3052_v38 }
  0x23   :  { %v3133_v20 = vsub.f32 %v527_v5, %v579_v14  ;;  %v658_v35 = vand.u32 4294901760, %v3102_v63  ;;  %v665_v39 = vand.u32 4294901760, %v3104_v2  ;;  %v672_v46 = vand.u32 4294901760, %v3106_v3 }
  0x24   :  { %2117 = vmatmul.mubr.f32.vlgmr.msra.gmra.mrb[0].mxu0 %v120_v10  ;;  %v3136_v21 = vpack.c.bf16 %v582_v15, %v579_v14  ;;  %v3138_v22 = vsub.f32 %v528_v6, %v582_v15  ;;  %v638_v24 = vsub.f32 %v3018_v18, %v637_v19  ;;  %v652_v32 = vsub.f32 %v3052_v38, %v651_v28 }
  0x25   :  { %2563 = vmatpush3.bf16.msra.mxu0 %v2547_v13  ;;  %2123 = vmatprep.mubr.msk.f32.mxu0 %vm2943_vm0, %v2944_v1  ;;  %v3128_v13 = vsub.f32 %v526_v60, %v576_v62  ;;  %v659_v41 = vsub.f32 %v3102_v63, %v658_v35  ;;  %v666_v42 = vsub.f32 %v3104_v2, %v665_v39  ;;  %v679_v47 = vand.u32 4294901760, %v3108_v4 }
  0x26   :  { %2708 = vmatprep.subr.bf16.mxu0 %v2942_v0  ;;  %v639_v26 = vand.u32 4294901760, %v638_v24  ;;  %v653_v34 = vand.u32 4294901760, %v652_v32  ;;  %v673_v50 = vsub.f32 %v3106_v3, %v672_v46  ;;  %v693_v56 = vand.u32 4294901760, %v3118_v8 }
  0x27   :  { %v660_v44 = vand.u32 4294901760, %v659_v41  ;;  %v667_v45 = vand.u32 4294901760, %v666_v42  ;;  %v680_v51 = vsub.f32 %v3108_v4, %v679_v47  ;;  %v3685_v5 = vand.u32 4294901760, %v3120_v9 }
  0x28   :  { %2096 = vmatmul.mubr.f32.vlgmr.msra.gmra.mrb[0].mxu1 %v120_v10  ;;  %v674_v52 = vand.u32 4294901760, %v673_v50  ;;  %v694_v60 = vsub.f32 %v3118_v8, %v693_v56 }
  0x29   :  { %2554 = vmatpush3.bf16.msra.mxu1 %v2553_v30  ;;  %2102 = vmatprep.mubr.msk.f32.mxu1 %vm2943_vm0, %v2944_v1  ;;  %v645_v30 = vsub.f32 %v3050_v37, %v644_v27  ;;  %v2595_v49 = vpack.c.bf16 %v667_v45, %v660_v44  ;;  %v681_v54 = vand.u32 4294901760, %v680_v51  ;;  %v701_v15 = vsub.f32 %v3120_v9, %v3685_v5 }
  0x2a   :  { %2564 = vmatprep.subr.bf16.mxu1 %v2942_v0  ;;  %v695_v62 = vand.u32 4294901760, %v694_v60  ;;  %v3681_v44 = vand.u32 4294901760, %v3133_v20  ;;  %v3680_v45 = vand.u32 4294901760, %v3138_v22 }
  0x2b   :  { %v646_v33 = vand.u32 4294901760, %v645_v30  ;;  %v702_v24 = vand.u32 4294901760, %v701_v15  ;;  %v3682_v30 = vand.u32 4294901760, %v3128_v13  ;;  %v2619_v15 = vpack.c.bf16 %v3104_v2, %v3102_v63 }
  0x2c   :  { %2124 = vmatmul.mubr.f32.vlgmr.msra.gmra.mrb[0].mxu0 %v120_v10  ;;  %v3122_v10 = vsub.f32 %v524_v55, %v570_v57  ;;  %v686_v55 = vand.u32 4294901760, %v3116_v7  ;;  %v2598_v57 = vpack.c.bf16 %v681_v54, %v674_v52  ;;  %v729_v51 = vsub.f32 %v3133_v20, %v3681_v44 }
  0x2d   :  { %2368 = vmatprep.mubr.msk.f32.mxu0 %vm2943_vm0, %v2944_v1  ;;  %v3160_v40 = vpack.c.bf16 %v653_v34, %v646_v33  ;;  %v722_v34 = vsub.f32 %v3128_v13, %v3682_v30  ;;  %v736_v52 = vsub.f32 %v3138_v22, %v3680_v45 }
  0x2e   :  { %v687_v59 = vsub.f32 %v3116_v7, %v686_v55  ;;  %v3684_v6 = vand.u32 4294901760, %v3122_v10  ;;  %v730_v54 = vand.u32 4294901760, %v729_v51  ;;  %v1859_v51 = vld [vmem:[%s3674_s2] ss:$0 sm:$0xff]  ;;  %v3691_v63 = vand.u32 4294901760, %v3122_v10 }
  0x2f   :  { %v723_v42 = vand.u32 4294901760, %v722_v34  ;;  %v2634_v34 = vpack.c.bf16 %v3138_v22, %v3133_v20 }
  0x30   :  { %2103 = vmatmul.mubr.f32.vlgmr.msra.gmra.mrb[0].mxu1 %v121_v16  ;;  %v630_v16 = vand.u32 4294901760, %v3016_v17  ;;  %v688_v61 = vand.u32 4294901760, %v687_v59  ;;  %v737_v59 = vand.u32 4294901760, %v736_v52 }
  0x31   :  { %2566 = vmatpush3.bf16.msra.mxu1 %v3034_v31  ;;  %2158 = vmatprep.mubr.msk.f32.mxu1 %vm2943_vm0, %v2944_v1 }
  0x32   :  { %2567 = vmatprep.subr.bf16.mxu1 %v2942_v0  ;;  %v631_v23 = vsub.f32 %v3016_v17, %v630_v16  ;;  %v2601_v14 = vpack.c.bf16 %v695_v62, %v688_v61  ;;  %v2610_v60 = vpack.c.bf16 %v737_v59, %v730_v54  ;;  %v2613_v61 = vpack.c.bf16 %v3018_v18, %v3016_v17 }
  0x33   :  { %v2616_v62 = vpack.c.bf16 %v3052_v38, %v3050_v37  ;;  %v2667_v17 = vpack.c.bf16 %v665_v39, %v658_v35  ;;  %v2670_v18 = vpack.c.bf16 %v679_v47, %v672_v46  ;;  %v2673_v37 = vpack.c.bf16 %v693_v56, %v686_v55  ;;  %v1189_v35 = vld [vmem:[%s3677_s5 + $0x58] sm:$0xff]  ;;  %v1190_v55 = vld [vmem:[%s3677_s5 + $0x60] sm:$0xff]  ;;  %v1191_v56 = vld [vmem:[%s3677_s5 + $0x68] sm:$0xff] }
  0x34   :  { %v632_v25 = vand.u32 4294901760, %v631_v23  ;;  %v708_v23 = vsub.f32 %v3122_v10, %v3684_v6  ;;  %v3690_v38 = vand.u32 4294901760, %v3120_v9  ;;  %v1235_v46 = vand.u32 4294901760, %v1189_v35 }
  0x35   :  { %2569 = vmatpush3.bf16.msra.mxu1 %v3048_v36 }
  0x36   :  { %2570 = vmatprep.subr.bf16.mxu1 %v2942_v0  ;;  %v3150_v29 = vpack.c.bf16 %v639_v26, %v632_v25  ;;  %v709_v25 = vand.u32 4294901760, %v708_v23  ;;  %v3683_v26 = vand.u32 4294901760, %v3126_v12  ;;  %v2622_v23 = vpack.c.bf16 %v3108_v4, %v3106_v3 }
  0x37   :  { %v2676_v2 = vpack.c.bf16 %v3691_v63, %v3690_v38  ;;  %v3692_v3 = vand.u32 4294901760, %v3126_v12  ;;  %v3693_v4 = vand.u32 4294901760, %v3128_v13 }
  0x38   :  { %v2604_v32 = vpack.c.bf16 %v709_v25, %v702_v24  ;;  %v715_v33 = vsub.f32 %v3126_v12, %v3683_v26  ;;  %v2625_v24 = vpack.c.bf16 %v3118_v8, %v3116_v7  ;;  %v2628_v25 = vpack.c.bf16 %v3122_v10, %v3120_v9  ;;  %v1185_v9 = vld [vmem:[%s3677_s5 + $0x38] sm:$0xff] }
  0x39   :  { %2572 = vmatpush3.bf16.msra.mxu1 %v3062_v43  ;;  %v3694_v7 = vand.u32 4294901760, %v3133_v20  ;;  %v3695_v8 = vand.u32 4294901760, %v3138_v22  ;;  %v1187_v20 = vld [vmem:[%s3677_s5 + $0x48] sm:$0xff] }
  0x3a   :  { %2573 = vmatprep.subr.bf16.mxu1 %v2942_v0  ;;  %v716_v41 = vand.u32 4294901760, %v715_v33  ;;  %v2631_v33 = vpack.c.bf16 %v3128_v13, %v3126_v12  ;;  %v1186_v13 = vld [vmem:[%s3677_s5 + $0x40] sm:$0xff]  ;;  %v1229_v22 = vand.u32 4294901760, %v1187_v20 }
  0x3c   :  { %v2607_v50 = vpack.c.bf16 %v723_v42, %v716_v41 }
  0x3d   :  { %2575 = vmatpush3.bf16.msra.mxu1 %v3072_v48 }
  0x3e   :  { %2576 = vmatprep.subr.bf16.mxu1 %v2942_v0 }
  0x41   :  { %2578 = vmatpush3.bf16.msra.mxu1 %v3082_v53 }
  0x42   :  { %2579 = vmatprep.subr.bf16.mxu1 %v2942_v0 }
  0x45   :  { %2581 = vmatpush3.bf16.msra.mxu1 %v3092_v58 }
  0x46   :  { %2582 = vmatprep.subr.bf16.mxu1 %v2942_v0 }
  0x49   :  { %2584 = vmatpush3.bf16.msra.mxu1 %v3124_v11 }
  0x4a   :  { %2585 = vmatprep.subr.bf16.mxu1 %v2942_v0 }
  0x4d   :  { %2587 = vmatpush3.bf16.msra.mxu1 %v3136_v21 }
  0x4e   :  { %2588 = vmatprep.subr.bf16.mxu1 %v2942_v0 }
  0xff   :  { %v508_v41 = vpop.f32.mrb[0].mxu0 }
 0x100   :  { %v2125_v42 = vpop.f32.mrb[1].mxu0 }
 0x103   :  { %v283_v52 = vpop.f32.mrb[0].mxu1 }
 0x104   :  { %v2852_v54 = vadd.f32 %v1859_v51, %v283_v52  ;;  %v2104_v59 = vpop.f32.mrb[1].mxu1 }
 0x105   :  { %v3446_v59 = vsub.f32 %v1187_v20, %v1229_v22 }
 0x106   :  { %v2853_v45 = vadd.f32 %v2852_v54, %v508_v41 }
 0x108   :  { %2889 = vtanh.f32 %v2853_v45 }
 0x112   :  { %v2890_v44 = vpop.eup %2889 }
 0x113   :  { %v3227_v30 = vand.u32 4294901760, %v2890_v44 }
 0x115   :  { %v3230_v26 = vsub.f32 %v2890_v44, %v3227_v30 }
 0x117   :  { %v619_v6 = vand.u32 4294901760, %v3230_v26 }
 0x119   :  { %v620_v42 = vsub.f32 %v3230_v26, %v619_v6 }
 0x11b   :  { %v621_v5 = vand.u32 4294901760, %v620_v42 }
 0x11d   :  { %2159 = vmatmul.mubr.f32.vlgmr.msra.gmra.mrb[2].mxu1 %v621_v5 }
 0x11e   :  { %2590 = vmatpush3.bf16.msra.mxu1 %v3150_v29  ;;  %2193 = vmatprep.mubr.msk.f32.mxu1 %vm2943_vm0, %v2944_v1  ;;  %v1178_v29 = vld [vmem:[%s3677_s5] sm:$0xff] }
 0x11f   :  { %2591 = vmatprep.subr.bf16.mxu1 %v2942_v0 }
 0x122   :  { %2593 = vmatpush3.bf16.msra.mxu1 %v3160_v40  ;;  %v1179_v40 = vld [vmem:[%s3677_s5 + $0x8] sm:$0xff] }
 0x123   :  { %2594 = vmatprep.subr.bf16.mxu1 %v2942_v0  ;;  %v1205_v5 = vand.u32 4294901760, %v1179_v40 }
 0x126   :  { %2596 = vmatpush3.bf16.msra.mxu1 %v2595_v49  ;;  %v1180_v49 = vld [vmem:[%s3677_s5 + $0x10] sm:$0xff] }
 0x127   :  { %2597 = vmatprep.subr.bf16.mxu1 %v2942_v0 }
 0x12a   :  { %2599 = vmatpush3.bf16.msra.mxu1 %v2598_v57  ;;  %v1202_v57 = vand.u32 4294901760, %v1178_v29 }
 0x12b   :  { %2600 = vmatprep.subr.bf16.mxu1 %v2942_v0 }
 0x12c   :  { %v3264_v45 = vpack.c.bf16 %v1205_v5, %v1202_v57 }
 0x12e   :  { %2602 = vmatpush3.bf16.msra.mxu1 %v2601_v14  ;;  %v1181_v14 = vld [vmem:[%s3677_s5 + $0x18] sm:$0xff]  ;;  %2710 = vmatpush3.bf16.msra.mxu0 %v3264_v45 }
 0x12f   :  { %2603 = vmatprep.subr.bf16.mxu1 %v2942_v0  ;;  %v1211_v44 = vand.u32 4294901760, %v1181_v14  ;;  %2711 = vmatprep.subr.bf16.mxu0 %v2942_v0 }
 0x131   :  { %v3272_v41 = vsub.f32 %v1181_v14, %v1211_v44 }
 0x132   :  { %2605 = vmatpush3.bf16.msra.mxu1 %v2604_v32  ;;  %v1208_v32 = vand.u32 4294901760, %v1180_v49 }
 0x133   :  { %2606 = vmatprep.subr.bf16.mxu1 %v2942_v0  ;;  %v1316_v38 = vand.u32 4294901760, %v3272_v41 }
 0x134   :  { %v3275_v51 = vpack.c.bf16 %v1211_v44, %v1208_v32 }
 0x136   :  { %2608 = vmatpush3.bf16.msra.mxu1 %v2607_v50  ;;  %v3266_v50 = vsub.f32 %v1178_v29, %v1202_v57  ;;  %2713 = vmatpush3.bf16.msra.mxu0 %v3275_v51  ;;  %v3450_v29 = vsub.f32 %v1189_v35, %v1235_v46 }
 0x137   :  { %2609 = vmatprep.subr.bf16.mxu1 %v2942_v0  ;;  %2714 = vmatprep.subr.bf16.mxu0 %v2942_v0 }
 0x138   :  { %v1295_v14 = vand.u32 4294901760, %v3266_v50 }
 0x13a   :  { %2611 = vmatpush3.bf16.msra.mxu1 %v2610_v60  ;;  %v3268_v60 = vsub.f32 %v1179_v40, %v1205_v5 }
 0x13b   :  { %2612 = vmatprep.subr.bf16.mxu1 %v2942_v0 }
 0x13d   :  { %2194 = vmatmul.mubr.f32.vlgmr.msra.gmra.mrb[2].mxu1 %v3227_v30 }
 0x13e   :  { %2614 = vmatpush3.bf16.msra.mxu1 %v2613_v61  ;;  %2228 = vmatprep.mubr.msk.f32.mxu1 %vm2943_vm0, %v2944_v1  ;;  %v3270_v61 = vsub.f32 %v1180_v49, %v1208_v32  ;;  %v1302_v32 = vand.u32 4294901760, %v3268_v60 }
 0x13f   :  { %2615 = vmatprep.subr.bf16.mxu1 %v2942_v0 }
 0x142   :  { %2617 = vmatpush3.bf16.msra.mxu1 %v2616_v62  ;;  %v2661_v62 = vpack.c.bf16 %v637_v19, %v630_v16  ;;  %v2679_v16 = vpack.c.bf16 %v3693_v4, %v3692_v3  ;;  %v2682_v19 = vpack.c.bf16 %v3695_v8, %v3694_v7  ;;  %v1317_v4 = vsub.f32 %v3272_v41, %v1316_v38 }
 0x143   :  { %2618 = vmatprep.subr.bf16.mxu1 %v2942_v0 }
 0x144   :  { %v1318_v8 = vand.u32 4294901760, %v1317_v4 }
 0x146   :  { %2620 = vmatpush3.bf16.msra.mxu1 %v2619_v15  ;;  %v2664_v15 = vpack.c.bf16 %v651_v28, %v644_v27  ;;  %v1188_v28 = vld [vmem:[%s3677_s5 + $0x50] sm:$0xff] }
 0x147   :  { %2621 = vmatprep.subr.bf16.mxu1 %v2942_v0  ;;  %v1232_v39 = vand.u32 4294901760, %v1188_v28 }
 0x149   :  { %v3417_v47 = vpack.c.bf16 %v1235_v46, %v1232_v39  ;;  %v3448_v42 = vsub.f32 %v1188_v28, %v1232_v39  ;;  %v1358_v39 = vand.u32 4294901760, %v3446_v59 }
 0x14a   :  { %2623 = vmatpush3.bf16.msra.mxu1 %v2622_v23  ;;  %v1192_v23 = vld [vmem:[%s3677_s5 + $0x70] sm:$0xff] }
 0x14b   :  { %2624 = vmatprep.subr.bf16.mxu1 %v2942_v0  ;;  %v1244_v57 = vand.u32 4294901760, %v1192_v23 }
 0x14e   :  { %2626 = vmatpush3.bf16.msra.mxu1 %v2625_v24  ;;  %v1193_v24 = vld [vmem:[%s3677_s5 + $0x78] sm:$0xff] }
 0x14f   :  { %2627 = vmatprep.subr.bf16.mxu1 %v2942_v0  ;;  %v1247_v5 = vand.u32 4294901760, %v1193_v24 }
 0x151   :  { %v3459_v44 = vpack.c.bf16 %v1247_v5, %v1244_v57 }
 0x152   :  { %2629 = vmatpush3.bf16.msra.mxu1 %v2628_v25 }
 0x153   :  { %2630 = vmatprep.subr.bf16.mxu1 %v2942_v0 }
 0x156   :  { %2632 = vmatpush3.bf16.msra.mxu1 %v2631_v33 }
 0x157   :  { %2633 = vmatprep.subr.bf16.mxu1 %v2942_v0 }
 0x15a   :  { %2635 = vmatpush3.bf16.msra.mxu1 %v2634_v34 }
 0x15b   :  { %2636 = vmatprep.subr.bf16.mxu1 %v2942_v0 }
 0x15d   :  { %2229 = vmatmul.mubr.f32.vlgmr.msra.gmra.mrb[2].mxu1 %v3230_v26  ;;  %v1241_v26 = vand.u32 4294901760, %v1191_v56 }
 0x15e   :  { %2638 = vmatpush3.bf16.msra.mxu1 %v3034_v31  ;;  %2263 = vmatprep.mubr.msk.f32.mxu1 %vm2943_vm0, %v2944_v1 }
 0x15f   :  { %2639 = vmatprep.subr.bf16.mxu1 %v2942_v0  ;;  %v3455_v49 = vsub.f32 %v1191_v56, %v1241_v26  ;;  %v1359_v56 = vsub.f32 %v3446_v59, %v1358_v39 }
 0x162   :  { %2641 = vmatpush3.bf16.msra.mxu1 %v3048_v36 }
 0x163   :  { %2642 = vmatprep.subr.bf16.mxu1 %v2942_v0 }
 0x166   :  { %2644 = vmatpush3.bf16.msra.mxu1 %v3062_v43 }
 0x167   :  { %2645 = vmatprep.subr.bf16.mxu1 %v2942_v0 }
 0x16a   :  { %2647 = vmatpush3.bf16.msra.mxu1 %v3072_v48 }
 0x16b   :  { %2648 = vmatprep.subr.bf16.mxu1 %v2942_v0 }
 0x16e   :  { %2650 = vmatpush3.bf16.msra.mxu1 %v3082_v53 }
 0x16f   :  { %2651 = vmatprep.subr.bf16.mxu1 %v2942_v0 }
 0x172   :  { %2653 = vmatpush3.bf16.msra.mxu1 %v3092_v58 }
 0x173   :  { %2654 = vmatprep.subr.bf16.mxu1 %v2942_v0 }
 0x176   :  { %2656 = vmatpush3.bf16.msra.mxu1 %v3124_v11 }
 0x177   :  { %2657 = vmatprep.subr.bf16.mxu1 %v2942_v0 }
 0x17a   :  { %2659 = vmatpush3.bf16.msra.mxu1 %v3136_v21 }
 0x17b   :  { %2660 = vmatprep.subr.bf16.mxu1 %v2942_v0 }
 0x17d   :  { %2264 = vmatmul.mubr.f32.vlgmr.msra.gmra.mrb[2].mxu1 %v619_v6  ;;  %v1238_v6 = vand.u32 4294901760, %v1190_v55 }
 0x17e   :  { %2662 = vmatpush3.bf16.msra.mxu1 %v2661_v62  ;;  %2298 = vmatprep.mubr.msk.f32.mxu1 %vm2943_vm0, %v2944_v1  ;;  %v3461_v62 = vsub.f32 %v1192_v23, %v1244_v57  ;;  %v1365_v23 = vand.u32 4294901760, %v3448_v42 }
 0x17f   :  { %2663 = vmatprep.subr.bf16.mxu1 %v2942_v0  ;;  %v3453_v40 = vsub.f32 %v1190_v55, %v1238_v6 }
 0x182   :  { %2665 = vmatpush3.bf16.msra.mxu1 %v2664_v15  ;;  %v3463_v15 = vsub.f32 %v1193_v24, %v1247_v5  ;;  %v1372_v24 = vand.u32 4294901760, %v3450_v29  ;;  %v1366_v5 = vsub.f32 %v3448_v42, %v1365_v23 }
 0x183   :  { %2666 = vmatprep.subr.bf16.mxu1 %v2942_v0 }
 0x186   :  { %2668 = vmatpush3.bf16.msra.mxu1 %v2667_v17  ;;  %v1296_v17 = vsub.f32 %v3266_v50, %v1295_v14 }
 0x187   :  { %2669 = vmatprep.subr.bf16.mxu1 %v2942_v0 }
 0x188   :  { %v1297_v63 = vand.u32 4294901760, %v1296_v17  ;;  %v1373_v17 = vsub.f32 %v3450_v29, %v1372_v24 }
 0x18a   :  { %2671 = vmatpush3.bf16.msra.mxu1 %v2670_v18  ;;  %v1303_v18 = vsub.f32 %v3268_v60, %v1302_v32 }
 0x18b   :  { %2672 = vmatprep.subr.bf16.mxu1 %v2942_v0 }
 0x18e   :  { %2674 = vmatpush3.bf16.msra.mxu1 %v2673_v37  ;;  %v1309_v37 = vand.u32 4294901760, %v3270_v61 }
 0x18f   :  { %2675 = vmatprep.subr.bf16.mxu1 %v2942_v0 }
 0x190   :  { %v1310_v3 = vsub.f32 %v3270_v61, %v1309_v37 }
 0x192   :  { %2677 = vmatpush3.bf16.msra.mxu1 %v2676_v2  ;;  %v1304_v2 = vand.u32 4294901760, %v1303_v18  ;;  %v1311_v7 = vand.u32 4294901760, %v1310_v3  ;;  %v1367_v18 = vand.u32 4294901760, %v1366_v5  ;;  %v3688_v3 = vand.u32 4294901760, %v3455_v49 }
 0x193   :  { %2678 = vmatprep.subr.bf16.mxu1 %v2942_v0 }
 0x196   :  { %2680 = vmatpush3.bf16.msra.mxu1 %v2679_v16  ;;  %v3481_v16 = vpack.c.bf16 %v1304_v2, %v1297_v63  ;;  %v1374_v63 = vand.u32 4294901760, %v1373_v17  ;;  %v3689_v2 = vand.u32 4294901760, %v3453_v40 }
 0x197   :  { %2681 = vmatprep.subr.bf16.mxu1 %v2942_v0 }
 0x198   :  { %v2748_v4 = vpack.c.bf16 %v1374_v63, %v1367_v18  ;;  %v2772_v63 = vpack.c.bf16 %v3450_v29, %v3448_v42 }
 0x19a   :  { %2683 = vmatpush3.bf16.msra.mxu1 %v2682_v19 }
 0x19b   :  { %2684 = vmatprep.subr.bf16.mxu1 %v2942_v0 }
 0x19d   :  { %2299 = vmatmul.mubr.f32.vlgmr.msra.gmra.mrb[2].mxu1 %v3227_v30 }
 0x19e   :  { %2686 = vmatpush3.bf16.msra.mxu1 %v3034_v31  ;;  %2333 = vmatprep.mubr.msk.f32.mxu1 %vm2943_vm0, %v2944_v1  ;;  %v1182_v31 = vld [vmem:[%s3677_s5 + $0x20] sm:$0xff] }
 0x19f   :  { %2687 = vmatprep.subr.bf16.mxu1 %v2942_v0 }
 0x1a2   :  { %2689 = vmatpush3.bf16.msra.mxu1 %v3048_v36  ;;  %v1183_v36 = vld [vmem:[%s3677_s5 + $0x28] sm:$0xff] }
 0x1a3   :  { %2690 = vmatprep.subr.bf16.mxu1 %v2942_v0 }
 0x1a6   :  { %2692 = vmatpush3.bf16.msra.mxu1 %v3062_v43  ;;  %v1214_v43 = vand.u32 4294901760, %v1182_v31 }
 0x1a7   :  { %2693 = vmatprep.subr.bf16.mxu1 %v2942_v0 }
 0x1a8   :  { %v3435_v25 = vsub.f32 %v1182_v31, %v1214_v43 }
 0x1aa   :  { %2695 = vmatpush3.bf16.msra.mxu1 %v3072_v48  ;;  %v1217_v48 = vand.u32 4294901760, %v1183_v36  ;;  %v1323_v19 = vand.u32 4294901760, %v3435_v25 }
 0x1ab   :  { %2696 = vmatprep.subr.bf16.mxu1 %v2942_v0 }
 0x1ac   :  { %v3437_v33 = vsub.f32 %v1183_v36, %v1217_v48  ;;  %v3485_v36 = vpack.c.bf16 %v1318_v8, %v1311_v7  ;;  %v1380_v7 = vsub.f32 %v3453_v40, %v3689_v2  ;;  %v1387_v8 = vsub.f32 %v3455_v49, %v3688_v3 }
 0x1ae   :  { %2698 = vmatpush3.bf16.msra.mxu1 %v3082_v53  ;;  %v3387_v53 = vpack.c.bf16 %v1217_v48, %v1214_v43  ;;  %v1330_v31 = vand.u32 4294901760, %v3437_v33  ;;  %v1324_v43 = vsub.f32 %v3435_v25, %v1323_v19  ;;  %v2763_v5 = vpack.c.bf16 %v3437_v33, %v3435_v25 }
 0x1af   :  { %2699 = vmatprep.subr.bf16.mxu1 %v2942_v0  ;;  %v3696_v25 = vand.u32 4294901760, %v3453_v40 }
 0x1b0   :  { %2716 = vmatpush3.bf16.msra.mxu0 %v3387_v53  ;;  %v1331_v48 = vsub.f32 %v3437_v33, %v1330_v31  ;;  %v3697_v33 = vand.u32 4294901760, %v3455_v49 }
 0x1b1   :  { %2717 = vmatprep.subr.bf16.mxu0 %v2942_v0 }
 0x1b2   :  { %2701 = vmatpush3.bf16.msra.mxu1 %v3092_v58  ;;  %v1184_v58 = vld [vmem:[%s3677_s5 + $0x30] sm:$0xff] }
 0x1b3   :  { %2702 = vmatprep.subr.bf16.mxu1 %v2942_v0  ;;  %v1220_v10 = vand.u32 4294901760, %v1184_v58 }
 0x1b5   :  { %v3439_v34 = vsub.f32 %v1184_v58, %v1220_v10  ;;  %v1325_v58 = vand.u32 4294901760, %v1324_v43  ;;  %v1381_v43 = vand.u32 4294901760, %v1380_v7  ;;  %v2775_v7 = vpack.c.bf16 %v3455_v49, %v3453_v40 }
 0x1b6   :  { %2704 = vmatpush3.bf16.msra.mxu1 %v3124_v11  ;;  %v1223_v11 = vand.u32 4294901760, %v1185_v9 }
 0x1b7   :  { %2705 = vmatprep.subr.bf16.mxu1 %v2942_v0 }
 0x1b8   :  { %v3397_v12 = vpack.c.bf16 %v1223_v11, %v1220_v10  ;;  %v3441_v52 = vsub.f32 %v1185_v9, %v1223_v11  ;;  %v1337_v9 = vand.u32 4294901760, %v3439_v34  ;;  %v1332_v11 = vand.u32 4294901760, %v1331_v48 }
 0x1b9   :  { %v1388_v48 = vand.u32 4294901760, %v1387_v8  ;;  %v2778_v8 = vpack.c.bf16 %v3463_v15, %v3461_v62 }
 0x1ba   :  { %2707 = vmatpush3.bf16.msra.mxu1 %v3136_v21  ;;  %2719 = vmatpush3.bf16.msra.mxu0 %v3397_v12  ;;  %v1226_v21 = vand.u32 4294901760, %v1186_v13  ;;  %v1344_v10 = vand.u32 4294901760, %v3441_v52  ;;  %v2766_v17 = vpack.c.bf16 %v3441_v52, %v3439_v34 }
 0x1bb   :  { %2720 = vmatprep.subr.bf16.mxu0 %v2942_v0 }
 0x1bc   :  { %v3407_v27 = vpack.c.bf16 %v1229_v22, %v1226_v21  ;;  %v3444_v54 = vsub.f32 %v1186_v13, %v1226_v21  ;;  %v1338_v13 = vsub.f32 %v3439_v34, %v1337_v9  ;;  %v1345_v20 = vsub.f32 %v3441_v52, %v1344_v10 }
 0x1bd   :  { %2334 = vmatmul.mubr.f32.vlgmr.msra.gmra.mrb[2].mxu1 %v3227_v30  ;;  %v3427_v30 = vpack.c.bf16 %v1241_v26, %v1238_v6  ;;  %v2739_v21 = vpack.c.bf16 %v1332_v11, %v1325_v58  ;;  %v1360_v26 = vand.u32 4294901760, %v1359_v56  ;;  %v3687_v58 = vand.u32 4294901760, %v3461_v62 }
 0x1be   :  { %2722 = vmatpush3.bf16.msra.mxu0 %v3407_v27  ;;  %v1339_v22 = vand.u32 4294901760, %v1338_v13  ;;  %v1346_v28 = vand.u32 4294901760, %v1345_v20  ;;  %v1351_v35 = vand.u32 4294901760, %v3444_v54  ;;  %v3686_v11 = vand.u32 4294901760, %v3463_v15 }
 0x1bf   :  { %2723 = vmatprep.subr.bf16.mxu0 %v2942_v0  ;;  %v2751_v13 = vpack.c.bf16 %v1388_v48, %v1381_v43  ;;  %v1394_v20 = vsub.f32 %v3461_v62, %v3687_v58  ;;  %v2769_v18 = vpack.c.bf16 %v3446_v59, %v3444_v54  ;;  %v1860_v43 = vld [vmem:[%s3676_s4] ss:$0 sm:$0xff]  ;;  %v2823_v34 = vpack.c.bf16 %v3697_v33, %v3696_v25 }
 0x1c0   :  { %v2742_v46 = vpack.c.bf16 %v1346_v28, %v1339_v22  ;;  %v1352_v55 = vsub.f32 %v3444_v54, %v1351_v35  ;;  %v1401_v22 = vsub.f32 %v3463_v15, %v3686_v11  ;;  %v3698_v52 = vand.u32 4294901760, %v3461_v62 }
 0x1c1   :  { %v1395_v28 = vand.u32 4294901760, %v1394_v20  ;;  %v3699_v54 = vand.u32 4294901760, %v3463_v15 }
 0x1c2   :  { %2725 = vmatpush3.bf16.msra.mxu0 %v3417_v47  ;;  %v1353_v6 = vand.u32 4294901760, %v1352_v55  ;;  %v1402_v55 = vand.u32 4294901760, %v1401_v22 }
 0x1c3   :  { %2726 = vmatprep.subr.bf16.mxu0 %v2942_v0  ;;  %v2826_v59 = vpack.c.bf16 %v3699_v54, %v3698_v52 }
 0x1c4   :  { %v2745_v57 = vpack.c.bf16 %v1360_v26, %v1353_v6  ;;  %v2754_v56 = vpack.c.bf16 %v1402_v55, %v1395_v28  ;;  %v2757_v6 = vpack.c.bf16 %v3268_v60, %v3266_v50  ;;  %v2760_v26 = vpack.c.bf16 %v3272_v41, %v3270_v61 }
 0x1c5   :  { %v2811_v50 = vpack.c.bf16 %v1330_v31, %v1323_v19  ;;  %v2814_v60 = vpack.c.bf16 %v1344_v10, %v1337_v9  ;;  %v2817_v61 = vpack.c.bf16 %v1358_v39, %v1351_v35  ;;  %v2820_v41 = vpack.c.bf16 %v1372_v24, %v1365_v23 }
 0x1c6   :  { %2728 = vmatpush3.bf16.msra.mxu0 %v3427_v30 }
 0x1c7   :  { %2729 = vmatprep.subr.bf16.mxu0 %v2942_v0 }
 0x1ca   :  { %2731 = vmatpush3.bf16.msra.mxu0 %v3459_v44 }
 0x1cb   :  { %2732 = vmatprep.subr.bf16.mxu0 %v2942_v0 }
 0x290   :  { %v1173_v48 = vpop.f32.mrb[2].mxu1 }
 0x291   :  { %v2854_v20 = vadd.f32 %v1860_v43, %v1173_v48  ;;  %v2335_v22 = vpop.f32.mrb[3].mxu1 }
 0x293   :  { %2891 = vtanh.f32 %v2854_v20 }
 0x29d   :  { %v2892_v28 = vpop.eup %2891 }
 0x29e   :  { %v3552_v55 = vand.u32 4294901760, %v2892_v28 }
 0x2a0   :  { %v1283_v11 = vsub.f32 %v2892_v28, %v3552_v55 }
 0x2a2   :  { %v1284_v58 = vand.u32 4294901760, %v1283_v11 }
 0x2a4   :  { %v1285_v3 = vsub.f32 %v1283_v11, %v1284_v58 }
 0x2a6   :  { %v1286_v2 = vand.u32 4294901760, %v1285_v3 }
 0x2a8   :  { %2369 = vmatmul.mubr.f32.vlgmr.msra.gmra.mrb[2].mxu0 %v1286_v2 }
 0x2a9   :  { %2734 = vmatpush3.bf16.msra.mxu0 %v3481_v16  ;;  %2403 = vmatprep.mubr.msk.f32.mxu0 %vm2943_vm0, %v2944_v1  ;;  %v2805_v16 = vpack.c.bf16 %v1302_v32, %v1295_v14 }
 0x2aa   :  { %2735 = vmatprep.subr.bf16.mxu0 %v2942_v0 }
 0x2ad   :  { %2737 = vmatpush3.bf16.msra.mxu0 %v3485_v36  ;;  %v2808_v36 = vpack.c.bf16 %v1316_v38, %v1309_v37 }
 0x2ae   :  { %2738 = vmatprep.subr.bf16.mxu0 %v2942_v0 }
 0x2b1   :  { %2740 = vmatpush3.bf16.msra.mxu0 %v2739_v21 }
 0x2b2   :  { %2741 = vmatprep.subr.bf16.mxu0 %v2942_v0 }
 0x2b5   :  { %2743 = vmatpush3.bf16.msra.mxu0 %v2742_v46 }
 0x2b6   :  { %2744 = vmatprep.subr.bf16.mxu0 %v2942_v0 }
 0x2b9   :  { %2746 = vmatpush3.bf16.msra.mxu0 %v2745_v57 }
 0x2ba   :  { %2747 = vmatprep.subr.bf16.mxu0 %v2942_v0 }
 0x2bd   :  { %2749 = vmatpush3.bf16.msra.mxu0 %v2748_v4 }
 0x2be   :  { %2750 = vmatprep.subr.bf16.mxu0 %v2942_v0 }
 0x2c1   :  { %2752 = vmatpush3.bf16.msra.mxu0 %v2751_v13 }
 0x2c2   :  { %2753 = vmatprep.subr.bf16.mxu0 %v2942_v0 }
 0x2c5   :  { %2755 = vmatpush3.bf16.msra.mxu0 %v2754_v56 }
 0x2c6   :  { %2756 = vmatprep.subr.bf16.mxu0 %v2942_v0 }
 0x2c8   :  { %2404 = vmatmul.mubr.f32.vlgmr.msra.gmra.mrb[2].mxu0 %v3552_v55 }
 0x2c9   :  { %2758 = vmatpush3.bf16.msra.mxu0 %v2757_v6  ;;  %2438 = vmatprep.mubr.msk.f32.mxu0 %vm2943_vm0, %v2944_v1 }
 0x2ca   :  { %2759 = vmatprep.subr.bf16.mxu0 %v2942_v0 }
 0x2cd   :  { %2761 = vmatpush3.bf16.msra.mxu0 %v2760_v26 }
 0x2ce   :  { %2762 = vmatprep.subr.bf16.mxu0 %v2942_v0 }
 0x2d1   :  { %2764 = vmatpush3.bf16.msra.mxu0 %v2763_v5 }
 0x2d2   :  { %2765 = vmatprep.subr.bf16.mxu0 %v2942_v0 }
 0x2d5   :  { %2767 = vmatpush3.bf16.msra.mxu0 %v2766_v17 }
 0x2d6   :  { %2768 = vmatprep.subr.bf16.mxu0 %v2942_v0 }
 0x2d9   :  { %2770 = vmatpush3.bf16.msra.mxu0 %v2769_v18 }
 0x2da   :  { %2771 = vmatprep.subr.bf16.mxu0 %v2942_v0 }
 0x2dd   :  { %2773 = vmatpush3.bf16.msra.mxu0 %v2772_v63 }
 0x2de   :  { %2774 = vmatprep.subr.bf16.mxu0 %v2942_v0 }
 0x2e1   :  { %2776 = vmatpush3.bf16.msra.mxu0 %v2775_v7 }
 0x2e2   :  { %2777 = vmatprep.subr.bf16.mxu0 %v2942_v0 }
 0x2e5   :  { %2779 = vmatpush3.bf16.msra.mxu0 %v2778_v8 }
 0x2e6   :  { %2780 = vmatprep.subr.bf16.mxu0 %v2942_v0 }
 0x2e8   :  { %2439 = vmatmul.mubr.f32.vlgmr.msra.gmra.mrb[2].mxu0 %v1283_v11 }
 0x2e9   :  { %2782 = vmatpush3.bf16.msra.mxu0 %v3264_v45  ;;  %2473 = vmatprep.mubr.msk.f32.mxu0 %vm2943_vm0, %v2944_v1 }
 0x2ea   :  { %2783 = vmatprep.subr.bf16.mxu0 %v2942_v0 }
 0x2ed   :  { %2785 = vmatpush3.bf16.msra.mxu0 %v3275_v51 }
 0x2ee   :  { %2786 = vmatprep.subr.bf16.mxu0 %v2942_v0 }
 0x2f1   :  { %2788 = vmatpush3.bf16.msra.mxu0 %v3387_v53 }
 0x2f2   :  { %2789 = vmatprep.subr.bf16.mxu0 %v2942_v0 }
 0x2f5   :  { %2791 = vmatpush3.bf16.msra.mxu0 %v3397_v12 }
 0x2f6   :  { %2792 = vmatprep.subr.bf16.mxu0 %v2942_v0 }
 0x2f9   :  { %2794 = vmatpush3.bf16.msra.mxu0 %v3407_v27 }
 0x2fa   :  { %2795 = vmatprep.subr.bf16.mxu0 %v2942_v0 }
 0x2fd   :  { %2797 = vmatpush3.bf16.msra.mxu0 %v3417_v47 }
 0x2fe   :  { %2798 = vmatprep.subr.bf16.mxu0 %v2942_v0 }
 0x301   :  { %2800 = vmatpush3.bf16.msra.mxu0 %v3427_v30 }
 0x302   :  { %2801 = vmatprep.subr.bf16.mxu0 %v2942_v0 }
 0x305   :  { %2803 = vmatpush3.bf16.msra.mxu0 %v3459_v44 }
 0x306   :  { %2804 = vmatprep.subr.bf16.mxu0 %v2942_v0 }
 0x308   :  { %2474 = vmatmul.mubr.f32.vlgmr.msra.gmra.mrb[2].mxu0 %v1284_v58 }
 0x309   :  { %2806 = vmatpush3.bf16.msra.mxu0 %v2805_v16  ;;  %2508 = vmatprep.mubr.msk.f32.mxu0 %vm2943_vm0, %v2944_v1 }
 0x30a   :  { %2807 = vmatprep.subr.bf16.mxu0 %v2942_v0 }
 0x30d   :  { %2809 = vmatpush3.bf16.msra.mxu0 %v2808_v36 }
 0x30e   :  { %2810 = vmatprep.subr.bf16.mxu0 %v2942_v0 }
 0x311   :  { %2812 = vmatpush3.bf16.msra.mxu0 %v2811_v50 }
 0x312   :  { %2813 = vmatprep.subr.bf16.mxu0 %v2942_v0 }
 0x315   :  { %2815 = vmatpush3.bf16.msra.mxu0 %v2814_v60 }
 0x316   :  { %2816 = vmatprep.subr.bf16.mxu0 %v2942_v0 }
 0x319   :  { %2818 = vmatpush3.bf16.msra.mxu0 %v2817_v61 }
 0x31a   :  { %2819 = vmatprep.subr.bf16.mxu0 %v2942_v0 }
 0x31d   :  { %2821 = vmatpush3.bf16.msra.mxu0 %v2820_v41 }
 0x31e   :  { %2822 = vmatprep.subr.bf16.mxu0 %v2942_v0 }
 0x321   :  { %2824 = vmatpush3.bf16.msra.mxu0 %v2823_v34 }
 0x322   :  { %2825 = vmatprep.subr.bf16.mxu0 %v2942_v0 }
 0x325   :  { %2827 = vmatpush3.bf16.msra.mxu0 %v2826_v59 }
 0x326   :  { %2828 = vmatprep.subr.bf16.mxu0 %v2942_v0 }
 0x328   :  { %2509 = vmatmul.mubr.f32.vlgmr.msra.gmra.mrb[2].mxu0 %v3552_v55 }
 0x329   :  { %2830 = vmatpush3.bf16.msra.mxu0 %v3264_v45  ;;  %2543 = vmatprep.mubr.msk.f32.mxu0 %vm2943_vm0, %v2944_v1  ;;  %v1861_v1 = vld [vmem:[%s3678_s6] ss:$0 sm:$0xff] }
 0x32a   :  { %2831 = vmatprep.subr.bf16.mxu0 %v2942_v0 }
 0x32d   :  { %2833 = vmatpush3.bf16.msra.mxu0 %v3275_v51 }
 0x32e   :  { %2834 = vmatprep.subr.bf16.mxu0 %v2942_v0 }
 0x331   :  { %2836 = vmatpush3.bf16.msra.mxu0 %v3387_v53 }
 0x332   :  { %2837 = vmatprep.subr.bf16.mxu0 %v2942_v0 }
 0x335   :  { %2839 = vmatpush3.bf16.msra.mxu0 %v3397_v12 }
 0x336   :  { %2840 = vmatprep.subr.bf16.mxu0 %v2942_v0 }
 0x339   :  { %2842 = vmatpush3.bf16.msra.mxu0 %v3407_v27 }
 0x33a   :  { %2843 = vmatprep.subr.bf16.mxu0 %v2942_v0 }
 0x33d   :  { %2845 = vmatpush3.bf16.msra.mxu0 %v3417_v47 }
 0x33e   :  { %2846 = vmatprep.subr.bf16.mxu0 %v2942_v0 }
 0x341   :  { %2848 = vmatpush3.bf16.msra.mxu0 %v3427_v30 }
 0x342   :  { %2849 = vmatprep.subr.bf16.mxu0 %v2942_v0 }
 0x345   :  { %2851 = vmatpush3.bf16.msra.mxu0 %v3459_v44 }
 0x348   :  { %2544 = vmatmul.mubr.f32.vlgmr.msra.gmra.mrb[2].mxu0 %v3552_v55 }
 0x41b   :  { %v1838_v45 = vpop.f32.mrb[2].mxu0 }
 0x41c   :  { %v2855_v51 = vadd.f32 %v1861_v1, %v1838_v45  ;;  %v2545_v53 = vpop.f32.mrb[3].mxu0 }
 0x41e   :  { %1843 = vst.msk [vmem:[#allocation5] sm:$0xff] %vm1842_vm2, %v2855_v51 }
 0x41f   :  { %2926 = shalt.err (!%p2923_p12)
}
 0x420   :  { %s2927_s11 = scalar_lea.hbm %s3679_s7, 128 }
 0x421   :  { %p2928_p13 = scmp.ne.s32.totalorder %s3679_s7, %s2927_s11  ;;  %p2931_p0 = scmp.lt.u32.totalorder %s2927_s11, %s3679_s7 }
 0x423   :  { %p2933_p1 = pnand %p2931_p0, %p2928_p13 }
 0x425   :  { %2936 = shalt.err (!%p2933_p1)
}
 0x426   :  { %1853 = dma.vmem_to_hbm [thread:$0]  %s1851_s30, 128, %s3679_s7, [#allocation4]  }
 0x427   :  { %2939 = dma.done.wait [#allocation4], 128  }
 0x428   :  { %2940 = vsyncadd [#allocation4], 4294967168 }
 0x429   :  { %1857 = vsyncpa [#allocation3], 1 }
 0x42a   :  { %1858 = vsyncpa [#allocation4], 1 }

</bundles_post_ra>
